<compile_context>
chip_gen: v7x
topology: tpu7x:2x2x1
jax: 0.10.0
libtpu: 0.0.40
codegen_flags: <defaults>
</compile_context>

<pallas_src>
import jax
import jax.numpy as jnp
from jax.experimental import pallas as pl
from jax.experimental.pallas import tpu as pltpu

# ---- model dims (synthetic, deterministic) -------------------------------
B, C, H, W = 2, 4, 16, 16          # small image batch, NCHW (PyTorch convention)
D = C * H * W                       # 1024 flattened features
HID = 128                           # hidden width of the synthetic head
NUM_CLASSES = 10                    # 'cls' logits width
CLS_PAD = 128                       # lane-dense padded class dimension


def wrapped_model_kernel(x_ref, w1_ref, b1_ref, w2_ref, b2_ref, cls_ref):
    """cls = relu(x @ W1 + b1) @ W2 + b2, fused in a single invocation.

    x, W1 arrive as bf16 (halved HBM traffic); MXU accumulates in f32.
    The class axis is already padded to 128 lanes by the wrapper.
    """
    h = jnp.dot(x_ref[...], w1_ref[...], preferred_element_type=jnp.float32)
    h = jnp.maximum(h + b1_ref[...], 0.0)
    cls = jnp.dot(h, w2_ref[...], preferred_element_type=jnp.float32) + b2_ref[...]
    cls_ref[...] = cls.astype(cls_ref.dtype)


def wrapped_model_forward(x, w1, b1, w2, b2):
    """WrappedModel.forward: x (B,C,H,W) NCHW -> 'cls' logits (B, NUM_CLASSES)."""
    batch = x.shape[0]

    # glue: flatten exactly like torch's x.view(B, -1) on NCHW; stream x/W1 as bf16
    x_flat = x.reshape(batch, D).astype(jnp.bfloat16)
    w1_bf = w1.astype(jnp.bfloat16)
    b1_2d = b1.reshape(1, HID).astype(jnp.float32)

    # lane-dense padding of the classifier: (HID, 128) / (1, 128), zeros beyond 10
    w2_pad = jnp.zeros((HID, CLS_PAD), jnp.float32).at[:, :NUM_CLASSES].set(
        w2.astype(jnp.float32))
    b2_pad = jnp.zeros((1, CLS_PAD), jnp.float32).at[:, :NUM_CLASSES].set(
        b2.astype(jnp.float32))

    cost = pl.CostEstimate(
        flops=2 * batch * D * HID + 2 * batch * HID * CLS_PAD,
        transcendentals=0,
        bytes_accessed=(x_flat.size * 2 + w1_bf.size * 2
                        + b1_2d.size * 4 + w2_pad.size * 4 + b2_pad.size * 4
                        + batch * CLS_PAD * 4),
    )

    # No grid: whole arrays are brought into VMEM once (working set ~0.6 MiB,
    # well under the scoped VMEM default on v5e/v6e/v7x).
    cls_padded = pl.pallas_call(
        wrapped_model_kernel,
        out_shape=jax.ShapeDtypeStruct((batch, CLS_PAD), jnp.float32),
        cost_estimate=cost,
        compiler_params=pltpu.CompilerParams(),
    )(x_flat, w1_bf, b1_2d, w2_pad, b2_pad)

    # slice back to the real class count — this is the 'cls' entry the wrapper returns
    return cls_padded[:, :NUM_CLASSES]


if __name__ == "__main__":
    key = jax.random.PRNGKey(0)
    kx, k1, k2, k3, k4 = jax.random.split(key, 5)

    # deterministic synthetic parameters for the inner model's classifier head
    x = jax.random.normal(kx, (B, C, H, W), dtype=jnp.float32)   # {'image': x}
    w1 = jax.random.normal(k1, (D, HID), dtype=jnp.float32) * 0.02
    b1 = jax.random.normal(k2, (HID,), dtype=jnp.float32) * 0.01
    w2 = jax.random.normal(k3, (HID, NUM_CLASSES), dtype=jnp.float32) * 0.02
    b2 = jax.random.normal(k4, (NUM_CLASSES,), dtype=jnp.float32) * 0.01

    cls = wrapped_model_forward(x, w1, b1, w2, b2)
    cls = jax.block_until_ready(cls)

    # reference with the same bf16-cast streaming operands (matmul accumulates in f32)
    x_ref = x.reshape(B, D).astype(jnp.bfloat16).astype(jnp.float32)
    w1_ref = w1.astype(jnp.bfloat16).astype(jnp.float32)
    ref = jnp.maximum(x_ref @ w1_ref + b1, 0.0) @ w2 + b2

    assert cls.shape == (B, NUM_CLASSES)
    assert jnp.allclose(cls, ref, atol=1e-2, rtol=1e-2)

    print("KERNEL_OK")
</pallas_src>

<mosaic_0001>
module attributes {stable_mosaic.version = 11 : i64} {
  func.func @wrapped_model_kernel(%arg0: memref<2x1024xbf16, #tpu.memory_space<vmem>>, %arg1: memref<1024x128xbf16, #tpu.memory_space<vmem>>, %arg2: memref<1x128xf32, #tpu.memory_space<vmem>>, %arg3: memref<128x128xf32, #tpu.memory_space<vmem>>, %arg4: memref<1x128xf32, #tpu.memory_space<vmem>>, %arg5: memref<2x128xf32, #tpu.memory_space<vmem>>) attributes {dimension_semantics = [], scalar_prefetch = 0 : i64, scratch_operands = 0 : i64, tpu.core_type = #tpu.core_type<tc>} {
    %c0 = arith.constant 0 : index
    %c0_0 = arith.constant 0 : index
    %0 = vector.load %arg0[%c0, %c0_0] : memref<2x1024xbf16, #tpu.memory_space<vmem>>, vector<2x1024xbf16>
    %c0_1 = arith.constant 0 : index
    %c0_2 = arith.constant 0 : index
    %1 = vector.load %arg1[%c0_1, %c0_2] : memref<1024x128xbf16, #tpu.memory_space<vmem>>, vector<1024x128xbf16>
    %cst = arith.constant dense<0.000000e+00> : vector<2x128xf32>
    %2 = tpu.matmul %0, %1, %cst {dimension_numbers = #tpu.dot_dimension_numbers<[1], [0], [0], [1], [0, 0, 1, 1], [], []>} : vector<2x1024xbf16>, vector<1024x128xbf16>, vector<2x128xf32> -> vector<2x128xf32>
    %c0_3 = arith.constant 0 : index
    %c0_4 = arith.constant 0 : index
    %3 = vector.load %arg2[%c0_3, %c0_4] : memref<1x128xf32, #tpu.memory_space<vmem>>, vector<1x128xf32>
    %4 = vector.broadcast %3 : vector<1x128xf32> to vector<2x128xf32>
    %5 = arith.addf %2, %4 : vector<2x128xf32>
    %cst_5 = arith.constant 0.000000e+00 : f32
    %6 = vector.broadcast %cst_5 : f32 to vector<2x128xf32>
    %7 = arith.maximumf %5, %6 : vector<2x128xf32>
    %c0_6 = arith.constant 0 : index
    %c0_7 = arith.constant 0 : index
    %8 = vector.load %arg3[%c0_6, %c0_7] : memref<128x128xf32, #tpu.memory_space<vmem>>, vector<128x128xf32>
    %cst_8 = arith.constant dense<0.000000e+00> : vector<2x128xf32>
    %9 = tpu.matmul %7, %8, %cst_8 {dimension_numbers = #tpu.dot_dimension_numbers<[1], [0], [0], [1], [0, 0, 1, 1], [], []>} : vector<2x128xf32>, vector<128x128xf32>, vector<2x128xf32> -> vector<2x128xf32>
    %c0_9 = arith.constant 0 : index
    %c0_10 = arith.constant 0 : index
    %10 = vector.load %arg4[%c0_9, %c0_10] : memref<1x128xf32, #tpu.memory_space<vmem>>, vector<1x128xf32>
    %11 = vector.broadcast %10 : vector<1x128xf32> to vector<2x128xf32>
    %12 = arith.addf %9, %11 : vector<2x128xf32>
    %c0_11 = arith.constant 0 : index
    %c0_12 = arith.constant 0 : index
    %13 = vector.load %arg5[%c0_11, %c0_12] : memref<2x128xf32, #tpu.memory_space<vmem>>, vector<2x128xf32>
    tpu.vector_store %arg5[%c0_11, %c0_12], %12 {strides = array<i32>} : memref<2x128xf32, #tpu.memory_space<vmem>>, vector<2x128xf32>,
    return
  }
}

</mosaic_0001>

<bundles_post_ra>
// kernel: tpu_custom_call.1
= control target key start
LH: loop header
LB: loop body
LE: loop exit
PB: predicated region body
PF: predicated region fallthrough
CT: control target
= control target key end

     0   :  { %10 = vsyncpa [#allocation3], 0  ;;  %s1420_s0 = inlined_call_operand.hbm [shape: bf16[2,1024], index: 0, kind: input, shape index: {}]   ;;  %s1421_s1 = inlined_call_operand.hbm [shape: bf16[1024,128], index: 1, kind: input, shape index: {}]   ;;  %s1422_s2 = inlined_call_operand.vmem [shape: f32[1,128], index: 2, kind: input, shape index: {}]   ;;  %s1423_s3 = inlined_call_operand.hbm [shape: f32[128,128], index: 3, kind: input, shape index: {}]   ;;  %s1424_s4 = inlined_call_operand.vmem [shape: f32[1,128], index: 4, kind: input, shape index: {}]   ;;  %s1425_s5 = inlined_call_operand.hbm [shape: f32[2,128], index: 5, kind: output, shape index: {}]  }
   0x1   :  { %11 = vsyncpa [#allocation6], 0 }
   0x2   :  { %12 = vsyncpa [#allocation4], 0  ;;  %s1311_s18 = smov [#allocation5]   ;;  %s1217_s22 = scalar_lea.hbm %s1421_s1, 8192 }
   0x3   :  { %s28_s19 = sshll.u32 %s1311_s18, 4  ;;  %p1218_p0 = scmp.ne.s32.totalorder %s1421_s1, %s1217_s22  ;;  %s29_s19 = int_to_ptr.vmem [resolvable:$true] %s28_s19 }
   0x4   :  { %p1221_p1 = scmp.lt.u32.totalorder %s1217_s22, %s1421_s1 }
   0x6   :  { %p1223_p2 = pnand %p1221_p1, %p1218_p0 }
   0x8   :  { %1226 = shalt.err (!%p1223_p2)
}
   0x9   :  { %s1227_s27 = scalar_lea.vmem %s29_s19, 8192  ;;  %p1232_p4 = scmp.lt.s32.totalorder %s29_s19, %s29_s19 }
   0xa   :  { %p1228_p3 = scmp.ne.s32.totalorder %s29_s19, %s1227_s27  ;;  %p1233_p5 = scmp.lt.s32.totalorder %s1227_s27, %s1227_s27 }
   0xc   :  { %p1234_p6 = por %p1233_p5, %p1232_p4 }
   0xe   :  { %p1235_p7 = pnand %p1234_p6, %p1228_p3 }
  0x10   :  { %1238 = shalt.err (!%p1235_p7)
}
  0x11   :  { %s1312_s28 = smov 64   ;;  %s1313_s29 = smov 4  }
  0x12   :  { %34 = dma.hbm_to_vmem [thread:$0]  %s1421_s1, 8192, %s29_s19, [#allocation6], %s1312_s28, %s1312_s28, %s1313_s29  }
  0x13   :  { %s1314_s7 = smov [#allocation2]   ;;  %s1315_s9 = smov [#allocation7]  }
  0x14   :  { %s19_s8 = sshll.u32 %s1314_s7, 4  ;;  %s42_s10 = sshll.u32 %s1315_s9, 4  ;;  %s20_s8 = int_to_ptr.vmem [resolvable:$true] %s19_s8  ;;  %s43_s10 = int_to_ptr.vmem [resolvable:$true] %s42_s10 }
  0x15   :  { %s1239_s13 = scalar_lea.hbm %s1420_s0, 128 }
  0x16   :  { %p1240_p8 = scmp.ne.s32.totalorder %s1420_s0, %s1239_s13  ;;  %p1243_p9 = scmp.lt.u32.totalorder %s1239_s13, %s1420_s0 }
  0x18   :  { %p1245_p10 = pnand %p1243_p9, %p1240_p8 }
  0x1a   :  { %1248 = shalt.err (!%p1245_p10)
}
  0x1b   :  { %s1249_s1 = scalar_lea.vmem %s20_s8, 128  ;;  %p1254_p12 = scmp.lt.s32.totalorder %s20_s8, %s20_s8 }
  0x1c   :  { %p1250_p11 = scmp.ne.s32.totalorder %s20_s8, %s1249_s1  ;;  %p1255_p13 = scmp.lt.s32.totalorder %s1249_s1, %s1249_s1 }
  0x1e   :  { %p1256_p0 = por %p1255_p13, %p1254_p12 }
  0x20   :  { %p1257_p1 = pnand %p1256_p0, %p1250_p11 }
  0x22   :  { %1260 = shalt.err (!%p1257_p1)
}
  0x23   :  { %22 = dma.hbm_to_vmem [thread:$0]  %s1420_s0, 128, %s20_s8, [#allocation3]  }
  0x24   :  { %s1261_s22 = scalar_lea.hbm %s1423_s3, 2048 }
  0x25   :  { %p1262_p2 = scmp.ne.s32.totalorder %s1423_s3, %s1261_s22  ;;  %p1265_p3 = scmp.lt.u32.totalorder %s1261_s22, %s1423_s3 }
  0x27   :  { %p1267_p4 = pnand %p1265_p3, %p1262_p2 }
  0x29   :  { %1270 = shalt.err (!%p1267_p4)
}
  0x2a   :  { %s1271_s27 = scalar_lea.vmem %s43_s10, 2048  ;;  %p1276_p6 = scmp.lt.s32.totalorder %s43_s10, %s43_s10 }
  0x2b   :  { %p1272_p5 = scmp.ne.s32.totalorder %s43_s10, %s1271_s27  ;;  %p1277_p7 = scmp.lt.s32.totalorder %s1271_s27, %s1271_s27 }
  0x2d   :  { %p1278_p8 = por %p1277_p7, %p1276_p6 }
  0x2f   :  { %p1279_p9 = pnand %p1278_p8, %p1272_p5 }
  0x31   :  { %1282 = shalt.err (!%p1279_p9)
}
  0x32   :  { %s1316_s0 = smov 128   ;;  %s1317_s28 = smov 8  }
  0x33   :  { %48 = dma.hbm_to_vmem [thread:$0]  %s1423_s3, 2048, %s43_s10, [#allocation6], %s1316_s0, %s1316_s0, %s1317_s28  }
  0x34   :  { %1305 = dma.done.wait [#allocation3], 128  }
  0x35   :  { %1306 = vsyncadd [#allocation3], 4294967168 }
  0x36   :  { %1307 = dma.done.wait [#allocation6], 10240  }
  0x37   :  { %1308 = vsyncadd [#allocation6], 4294957056  ;;  %v1152_v0 = vld [vmem:[#allocation5 + $0x40] sm:$0xff]   ;;  %v1156_v4 = vld [vmem:[#allocation5 + $0x48] sm:$0xff]   ;;  %v1318_v22 = vmov 1966171168   ;;  %v202_v24 = vlaneseq }
  0x38   :  { %v1153_v1 = vld [vmem:[#allocation5 + $0xc0] sm:$0xff]   ;;  %976 = vmatprep.subr.bf16.mxu0 %v1152_v0  ;;  %v1157_v5 = vld [vmem:[#allocation5 + $0xc8] sm:$0xff]   ;;  %v1160_v8 = vld [vmem:[#allocation5 + $0x50] sm:$0xff]   ;;  %v200_v23 = vunpack.c.l.s4 %v1318_v22  ;;  %vm1320_vm0 = vmmov 0   ;;  %s1322_s8 = smov [#allocation8]  }
  0x39   :  { %v1154_v2 = vld [vmem:[#allocation5] sm:$0xff]   ;;  %998 = vmatprep.subr.bf16.mxu1 %v1153_v1  ;;  %v1158_v6 = vld [vmem:[#allocation5 + $0x8] sm:$0xff]   ;;  %v1161_v9 = vld [vmem:[#allocation5 + $0xd0] sm:$0xff]   ;;  %v203_v30 = vshrl.u32 %v202_v24, 7  ;;  %s900_s9 = sshll.u32 %s1322_s8, 4  ;;  %s901_s9 = int_to_ptr.vmem [resolvable:$true] %s900_s9 }
  0x3a   :  { %v1155_v3 = vld [vmem:[#allocation5 + $0x80] sm:$0xff]   ;;  %977 = vmatpush3.bf16.msra.mxu0 %v1154_v2  ;;  %v1159_v7 = vld [vmem:[#allocation5 + $0x88] sm:$0xff]   ;;  %v1162_v10 = vld [vmem:[#allocation5 + $0x10] sm:$0xff]   ;;  %v201_v29 = vunpack.c.0.s8 %v200_v23  ;;  %v1319_v23 = vmov 0.0|0.0   ;;  %s1283_s10 = scalar_lea.vmem %s901_s9, 32  ;;  %p1288_p11 = scmp.lt.s32.totalorder %s901_s9, %s901_s9 }
  0x3b   :  { %999 = vmatpush3.bf16.msra.mxu1 %v1155_v3  ;;  %978 = vmatprep.subr.bf16.mxu0 %v1156_v4  ;;  %v1163_v11 = vld [vmem:[#allocation5 + $0x90] sm:$0xff]   ;;  %v1164_v12 = vld [vmem:[#allocation5 + $0x58] sm:$0xff]   ;;  %v1168_v16 = vld [vmem:[#allocation5 + $0x60] sm:$0xff]   ;;  %p1284_p10 = scmp.ne.s32.totalorder %s901_s9, %s1283_s10  ;;  %p1289_p12 = scmp.lt.s32.totalorder %s1283_s10, %s1283_s10 }
  0x3c   :  { %1000 = vmatprep.subr.bf16.mxu1 %v1157_v5  ;;  %v1165_v13 = vld [vmem:[#allocation5 + $0xd8] sm:$0xff]   ;;  %v1169_v17 = vld [vmem:[#allocation5 + $0xe0] sm:$0xff]   ;;  %v1172_v20 = vld [vmem:[#allocation5 + $0x68] sm:$0xff]   ;;  %v1389_v35 = vsub.s32 %v201_v29, %v203_v30 }
  0x3d   :  { %v1166_v14 = vld [vmem:[#allocation5 + $0x18] sm:$0xff]   ;;  %v1170_v18 = vld [vmem:[#allocation5 + $0x20] sm:$0xff]   ;;  %v1173_v21 = vld [vmem:[#allocation5 + $0xe8] sm:$0xff]   ;;  %p1290_p13 = por %p1289_p12, %p1288_p11 }
  0x3e   :  { %979 = vmatpush3.bf16.msra.mxu0 %v1158_v6  ;;  %v1167_v15 = vld [vmem:[#allocation5 + $0x98] sm:$0xff]   ;;  %v1171_v19 = vld [vmem:[#allocation5 + $0xa0] sm:$0xff]   ;;  %v1174_v25 = vld [vmem:[#allocation5 + $0x28] sm:$0xff]  }
  0x3f   :  { %1001 = vmatpush3.bf16.msra.mxu1 %v1159_v7  ;;  %980 = vmatprep.subr.bf16.mxu0 %v1160_v8  ;;  %v1175_v26 = vld [vmem:[#allocation5 + $0xa8] sm:$0xff]   ;;  %v1176_v27 = vld [vmem:[#allocation5 + $0x70] sm:$0xff]   ;;  %v1180_v33 = vld [vmem:[#allocation5 + $0x78] sm:$0xff]   ;;  %p1291_p0 = pnand %p1290_p13, %p1284_p10 }
  0x40   :  { %1002 = vmatprep.subr.bf16.mxu1 %v1161_v9  ;;  %v1177_v28 = vld [vmem:[#allocation5 + $0xf0] sm:$0xff]   ;;  %v1181_v34 = vld [vmem:[#allocation5 + $0xf8] sm:$0xff]   ;;  %v1185_v41 = vld [vmem:[#allocation5 + $0x140] sm:$0xff]  }
  0x41   :  { %v1178_v31 = vld [vmem:[#allocation5 + $0x30] sm:$0xff]   ;;  %v1182_v36 = vld [vmem:[#allocation5 + $0x38] sm:$0xff]   ;;  %v1186_v42 = vld [vmem:[#allocation5 + $0x1c0] sm:$0xff]  }
  0x42   :  { %981 = vmatpush3.bf16.msra.mxu0 %v1162_v10  ;;  %v1179_v32 = vld [vmem:[#allocation5 + $0xb0] sm:$0xff]   ;;  %v1183_v37 = vld [vmem:[#allocation5 + $0xb8] sm:$0xff]   ;;  %v1187_v47 = vld [vmem:[#allocation5 + $0x100] sm:$0xff]  }
  0x43   :  { %1003 = vmatpush3.bf16.msra.mxu1 %v1163_v11  ;;  %982 = vmatprep.subr.bf16.mxu0 %v1164_v12  ;;  %v61_v38 = vld [vmem:[#allocation2] sm:$0xff]  ;;  %v1189_v50 = vld [vmem:[#allocation5 + $0x148] sm:$0xff]   ;;  %v1188_v52 = vld [vmem:[#allocation5 + $0x180] sm:$0xff]  }
  0x44   :  { %1004 = vmatprep.subr.bf16.mxu1 %v1165_v13  ;;  %v198_v39 = vcombine.high %v61_v38, %v61_v38  ;;  %v205_v40 = vrot.slane %v61_v38, %v1389_v35  ;;  %v1190_v54 = vld [vmem:[#allocation5 + $0x1c8] sm:$0xff]   ;;  %v1193_v57 = vld [vmem:[#allocation5 + $0x150] sm:$0xff]   ;;  %v1197_v61 = vld [vmem:[#allocation5 + $0x158] sm:$0xff]  }
  0x45   :  { %v1191_v55 = vld [vmem:[#allocation5 + $0x108] sm:$0xff]   ;;  %v1194_v59 = vld [vmem:[#allocation5 + $0x1d0] sm:$0xff]   ;;  %v1198_v63 = vld [vmem:[#allocation5 + $0x1d8] sm:$0xff]  }
  0x46   :  { %983 = vmatpush3.bf16.msra.mxu0 %v1166_v14  ;;  %v213_v43 = vcombine.high %v205_v40, %v205_v40  ;;  %v221_v44 = vrot.slane %v205_v40, %v1389_v35  ;;  %v1394_v45 = vrot.slane %v198_v39, %v1389_v35  ;;  %v1192_v58 = vld [vmem:[#allocation5 + $0x188] sm:$0xff]   ;;  %v1195_v60 = vld [vmem:[#allocation5 + $0x110] sm:$0xff]   ;;  %v1199_v0 = vld [vmem:[#allocation5 + $0x118] sm:$0xff]  }
  0x47   :  { %1005 = vmatpush3.bf16.msra.mxu1 %v1167_v15  ;;  %984 = vmatprep.subr.bf16.mxu0 %v1168_v16  ;;  %v1196_v62 = vld [vmem:[#allocation5 + $0x190] sm:$0xff]   ;;  %v1201_v1 = vld [vmem:[#allocation5 + $0x160] sm:$0xff]   ;;  %v1200_v2 = vld [vmem:[#allocation5 + $0x198] sm:$0xff]  }
  0x48   :  { %1006 = vmatprep.subr.bf16.mxu1 %v1169_v17  ;;  %v235_v46 = vrot.slane %v213_v43, %v1389_v35  ;;  %v214_v48 = vcombine.high %v1394_v45, %v1394_v45  ;;  %v243_v49 = vcombine.high %v221_v44, %v221_v44  ;;  %v1202_v3 = vld [vmem:[#allocation5 + $0x1e0] sm:$0xff]   ;;  %v1205_v5 = vld [vmem:[#allocation5 + $0x168] sm:$0xff]   ;;  %v1209_v9 = vld [vmem:[#allocation5 + $0x170] sm:$0xff]   ;;  %v228_v17 = vrot.slane %v1394_v45, %v1389_v35 }
  0x49   :  { %v1203_v4 = vld [vmem:[#allocation5 + $0x120] sm:$0xff]   ;;  %v1206_v7 = vld [vmem:[#allocation5 + $0x1e8] sm:$0xff]   ;;  %v1210_v11 = vld [vmem:[#allocation5 + $0x1f0] sm:$0xff]   ;;  %v1321_v45 = vmov 0.0  }
  0x4a   :  { %985 = vmatpush3.bf16.msra.mxu0 %v1170_v18  ;;  %671 = vmatprep.mubr.bf16.mxu0 %v235_v46  ;;  %v245_v51 = vcombine.high %v235_v46, %v235_v46  ;;  %v242_v53 = vrot.slane %v214_v48, %v1389_v35  ;;  %v1204_v6 = vld [vmem:[#allocation5 + $0x1a0] sm:$0xff]   ;;  %v1207_v8 = vld [vmem:[#allocation5 + $0x128] sm:$0xff]   ;;  %v1211_v12 = vld [vmem:[#allocation5 + $0x130] sm:$0xff]  }
  0x4b   :  { %1007 = vmatpush3.bf16.msra.mxu1 %v1171_v19  ;;  %986 = vmatprep.subr.bf16.mxu0 %v1172_v20  ;;  %v1208_v10 = vld [vmem:[#allocation5 + $0x1a8] sm:$0xff]   ;;  %v1213_v13 = vld [vmem:[#allocation5 + $0x178] sm:$0xff]   ;;  %v1212_v14 = vld [vmem:[#allocation5 + $0x1b0] sm:$0xff]   ;;  %v244_v19 = vcombine.high %v228_v17, %v228_v17 }
  0x4c   :  { %1008 = vmatprep.subr.bf16.mxu1 %v1173_v21  ;;  %711 = vmatprep.mubr.bf16.mxu1 %v245_v51  ;;  %v246_v56 = vcombine.high %v242_v53, %v242_v53  ;;  %v1214_v15 = vld [vmem:[#allocation5 + $0x1f8] sm:$0xff]   ;;  %v800_v20 = vld [vmem:[#allocation7] sm:$0xff]  ;;  %v801_v21 = vld [vmem:[#allocation7 + $0x8] sm:$0xff] }
  0x4d   :  { %v1215_v16 = vld [vmem:[#allocation5 + $0x138] sm:$0xff]   ;;  %v802_v22 = vld [vmem:[#allocation7 + $0x10] sm:$0xff]  ;;  %v1117_v24 = vpack.c.bf16 %v801_v21, %v800_v20  ;;  %v812_v39 = vld [vmem:[#allocation7 + $0x60] sm:$0xff] }
  0x4e   :  { %987 = vmatpush3.bf16.msra.mxu0 %v1174_v25  ;;  %v1216_v18 = vld [vmem:[#allocation5 + $0x1b8] sm:$0xff]   ;;  %v806_v30 = vld [vmem:[#allocation7 + $0x30] sm:$0xff]  ;;  %v813_v40 = vld [vmem:[#allocation7 + $0x68] sm:$0xff] }
  0x4f   :  { %1009 = vmatpush3.bf16.msra.mxu1 %v1175_v26  ;;  %988 = vmatprep.subr.bf16.mxu0 %v1176_v27  ;;  %v803_v25 = vld [vmem:[#allocation7 + $0x18] sm:$0xff]  ;;  %v804_v27 = vld [vmem:[#allocation7 + $0x20] sm:$0xff] }
  0x50   :  { %1010 = vmatprep.subr.bf16.mxu1 %v1177_v28  ;;  %v1120_v26 = vpack.c.bf16 %v803_v25, %v802_v22  ;;  %v805_v28 = vld [vmem:[#allocation7 + $0x28] sm:$0xff]  ;;  %v815_v43 = vld [vmem:[#allocation7 + $0x78] sm:$0xff] }
  0x51   :  { %v1123_v29 = vpack.c.bf16 %v805_v28, %v804_v27 }
  0x52   :  { %989 = vmatpush3.bf16.msra.mxu0 %v1178_v31  ;;  %v807_v31 = vld [vmem:[#allocation7 + $0x38] sm:$0xff] }
  0x53   :  { %1011 = vmatpush3.bf16.msra.mxu1 %v1179_v32  ;;  %990 = vmatprep.subr.bf16.mxu0 %v1180_v33  ;;  %v1126_v32 = vpack.c.bf16 %v807_v31, %v806_v30  ;;  %v808_v33 = vld [vmem:[#allocation7 + $0x40] sm:$0xff] }
  0x54   :  { %1012 = vmatprep.subr.bf16.mxu1 %v1181_v34  ;;  %v809_v34 = vld [vmem:[#allocation7 + $0x48] sm:$0xff] }
  0x55   :  { %v1129_v35 = vpack.c.bf16 %v809_v34, %v808_v33 }
  0x56   :  { %991 = vmatpush3.bf16.msra.mxu0 %v1182_v36  ;;  %v810_v36 = vld [vmem:[#allocation7 + $0x50] sm:$0xff] }
  0x57   :  { %1013 = vmatpush3.bf16.msra.mxu1 %v1183_v37  ;;  %1020 = vmatprep.subr.bf16.mxu0 %v1185_v41  ;;  %v811_v37 = vld [vmem:[#allocation7 + $0x58] sm:$0xff]  ;;  %v1135_v41 = vpack.c.bf16 %v813_v40, %v812_v39 }
  0x58   :  { %1042 = vmatprep.subr.bf16.mxu1 %v1186_v42  ;;  %v1132_v38 = vpack.c.bf16 %v811_v37, %v810_v36  ;;  %v814_v42 = vld [vmem:[#allocation7 + $0x70] sm:$0xff] }
  0x59   :  { %672 = vmatmul.mubr.bf16.vlgmr.msra.gmra.mrb[0].mxu0 %v221_v44  ;;  %v1138_v44 = vpack.c.bf16 %v815_v43, %v814_v42 }
  0x5a   :  { %1021 = vmatpush3.bf16.msra.mxu0 %v1187_v47  ;;  %712 = vmatmul.mubr.bf16.vlgmr.msra.gmra.mrb[0].mxu1 %v243_v49  ;;  %v910_v47 = vld [vmem:[%s1422_s2] ss:$0 sm:$0xff] }
  0x5b   :  { %1022 = vmatprep.subr.bf16.mxu0 %v1189_v50  ;;  %1043 = vmatpush3.bf16.msra.mxu1 %v1188_v52 }
  0x5c   :  { %751 = vmatprep.mubr.bf16.mxu0 %v242_v53  ;;  %1044 = vmatprep.subr.bf16.mxu1 %v1190_v54 }
  0x5d   :  { %791 = vmatprep.mubr.bf16.mxu1 %v246_v56 }
  0x5e   :  { %1023 = vmatpush3.bf16.msra.mxu0 %v1191_v55 }
  0x5f   :  { %1024 = vmatprep.subr.bf16.mxu0 %v1193_v57  ;;  %1045 = vmatpush3.bf16.msra.mxu1 %v1192_v58 }
  0x60   :  { %1046 = vmatprep.subr.bf16.mxu1 %v1194_v59 }
  0x62   :  { %1025 = vmatpush3.bf16.msra.mxu0 %v1195_v60 }
  0x63   :  { %1026 = vmatprep.subr.bf16.mxu0 %v1197_v61  ;;  %1047 = vmatpush3.bf16.msra.mxu1 %v1196_v62 }
  0x64   :  { %1048 = vmatprep.subr.bf16.mxu1 %v1198_v63 }
  0x66   :  { %1027 = vmatpush3.bf16.msra.mxu0 %v1199_v0 }
  0x67   :  { %1028 = vmatprep.subr.bf16.mxu0 %v1201_v1  ;;  %1049 = vmatpush3.bf16.msra.mxu1 %v1200_v2 }
  0x68   :  { %1050 = vmatprep.subr.bf16.mxu1 %v1202_v3 }
  0x6a   :  { %1029 = vmatpush3.bf16.msra.mxu0 %v1203_v4 }
  0x6b   :  { %1030 = vmatprep.subr.bf16.mxu0 %v1205_v5  ;;  %1051 = vmatpush3.bf16.msra.mxu1 %v1204_v6 }
  0x6c   :  { %1052 = vmatprep.subr.bf16.mxu1 %v1206_v7 }
  0x6e   :  { %1031 = vmatpush3.bf16.msra.mxu0 %v1207_v8  ;;  %v975_v8 = vld [vmem:[%s1424_s4] ss:$0 sm:$0xff] }
  0x6f   :  { %1032 = vmatprep.subr.bf16.mxu0 %v1209_v9  ;;  %1053 = vmatpush3.bf16.msra.mxu1 %v1208_v10 }
  0x70   :  { %1054 = vmatprep.subr.bf16.mxu1 %v1210_v11 }
  0x72   :  { %1033 = vmatpush3.bf16.msra.mxu0 %v1211_v12 }
  0x73   :  { %1034 = vmatprep.subr.bf16.mxu0 %v1213_v13  ;;  %1055 = vmatpush3.bf16.msra.mxu1 %v1212_v14 }
  0x74   :  { %1056 = vmatprep.subr.bf16.mxu1 %v1214_v15 }
  0x76   :  { %1035 = vmatpush3.bf16.msra.mxu0 %v1215_v16 }
  0x77   :  { %1057 = vmatpush3.bf16.msra.mxu1 %v1216_v18  ;;  %1116 = vmatprep.subr.bf16.mxu0 %v1319_v23 }
  0x79   :  { %752 = vmatmul.mubr.bf16.vlgmr.msra.gmra.mrb[4].mxu0 %v228_v17 }
  0x7a   :  { %792 = vmatmul.mubr.bf16.vlgmr.msra.gmra.mrb[4].mxu1 %v244_v19  ;;  %1118 = vmatpush3.bf16.msra.mxu0 %v1117_v24 }
  0x7b   :  { %1119 = vmatprep.subr.bf16.mxu0 %v1319_v23  ;;  %1113 = vmatprep.mubr.msk.f32.mxu0 %vm1320_vm0, %v1321_v45 }
  0x7e   :  { %1121 = vmatpush3.bf16.msra.mxu0 %v1120_v26 }
  0x7f   :  { %1122 = vmatprep.subr.bf16.mxu0 %v1319_v23 }
  0x82   :  { %1124 = vmatpush3.bf16.msra.mxu0 %v1123_v29 }
  0x83   :  { %1125 = vmatprep.subr.bf16.mxu0 %v1319_v23 }
  0x86   :  { %1127 = vmatpush3.bf16.msra.mxu0 %v1126_v32 }
  0x87   :  { %1128 = vmatprep.subr.bf16.mxu0 %v1319_v23 }
  0x8a   :  { %1130 = vmatpush3.bf16.msra.mxu0 %v1129_v35 }
  0x8b   :  { %1131 = vmatprep.subr.bf16.mxu0 %v1319_v23 }
  0x8e   :  { %1133 = vmatpush3.bf16.msra.mxu0 %v1132_v38 }
  0x8f   :  { %1134 = vmatprep.subr.bf16.mxu0 %v1319_v23 }
  0x92   :  { %1136 = vmatpush3.bf16.msra.mxu0 %v1135_v41 }
  0x93   :  { %1137 = vmatprep.subr.bf16.mxu0 %v1319_v23 }
  0x96   :  { %1139 = vmatpush3.bf16.msra.mxu0 %v1138_v44 }
 0x12c   :  { %v992_v46 = vpop.f32.mrb[0].mxu0 }
 0x12d   :  { %v993_v48 = vpop.f32.mrb[1].mxu0  ;;  %v1014_v49 = vpop.f32.mrb[0].mxu1 }
 0x12e   :  { %v994_v50 = vadd.f32 %v993_v48, %v992_v46  ;;  %v995_v51 = vpop.f32.mrb[2].mxu0  ;;  %v1015_v52 = vpop.f32.mrb[1].mxu1 }
 0x12f   :  { %v996_v53 = vpop.f32.mrb[3].mxu0  ;;  %v1016_v55 = vadd.f32 %v1015_v52, %v1014_v49  ;;  %v1017_v56 = vpop.f32.mrb[2].mxu1 }
 0x130   :  { %v674_v54 = vadd.f32 %v994_v50, %v910_v47  ;;  %v1018_v57 = vpop.f32.mrb[3].mxu1 }
 0x132   :  { %v714_v58 = vadd.f32 %v1016_v55, %v674_v54 }
 0x14c   :  { %v1036_v59 = vpop.f32.mrb[4].mxu0 }
 0x14d   :  { %v1037_v60 = vpop.f32.mrb[5].mxu0  ;;  %v1058_v61 = vpop.f32.mrb[4].mxu1 }
 0x14e   :  { %v1038_v62 = vadd.f32 %v1037_v60, %v1036_v59  ;;  %v1039_v63 = vpop.f32.mrb[6].mxu0  ;;  %v1059_v0 = vpop.f32.mrb[5].mxu1 }
 0x14f   :  { %v1040_v1 = vpop.f32.mrb[7].mxu0  ;;  %v1060_v3 = vadd.f32 %v1059_v0, %v1058_v61  ;;  %v1061_v4 = vpop.f32.mrb[6].mxu1 }
 0x150   :  { %v754_v2 = vadd.f32 %v1038_v62, %v714_v58  ;;  %v1062_v5 = vpop.f32.mrb[7].mxu1 }
 0x152   :  { %v794_v6 = vadd.f32 %v1060_v3, %v754_v2 }
 0x154   :  { %v799_v7 = vmax.f32 %v794_v6, 0.0 }
 0x156   :  { %1114 = vmatmul.mubr.f32.vlgmr.msra.gmra.mrb[8].mxu0 %v799_v7 }
 0x229   :  { %v889_v9 = vpop.f32.mrb[8].mxu0 }
 0x22a   :  { %v890_v10 = vadd.f32 %v975_v8, %v889_v9  ;;  %v1115_v11 = vpop.f32.mrb[9].mxu0 }
 0x22c   :  { %893 = vst [vmem:[#allocation8] sm:$0x3] %v890_v10 }
 0x22d   :  { %1294 = shalt.err (!%p1291_p0)
}
 0x22e   :  { %s1295_s13 = scalar_lea.hbm %s1425_s5, 32 }
 0x22f   :  { %p1296_p1 = scmp.ne.s32.totalorder %s1425_s5, %s1295_s13  ;;  %p1299_p2 = scmp.lt.u32.totalorder %s1295_s13, %s1425_s5 }
 0x231   :  { %p1301_p3 = pnand %p1299_p2, %p1296_p1 }
 0x233   :  { %1304 = shalt.err (!%p1301_p3)
}
 0x234   :  { %903 = dma.vmem_to_hbm [thread:$0]  %s901_s9, 32, %s1425_s5, [#allocation4]  }
 0x235   :  { %1309 = dma.done.wait [#allocation4], 32  }
 0x236   :  { %1310 = vsyncadd [#allocation4], 4294967264 }
 0x237   :  { %907 = vsyncpa [#allocation3], 1 }
 0x238   :  { %908 = vsyncpa [#allocation6], 1 }
 0x239   :  { %909 = vsyncpa [#allocation4], 1 }

</bundles_post_ra>
